<compile_context>
chip_gen: v7x
topology: tpu7x:2x2x1
jax: 0.10.0
libtpu: 0.0.40
codegen_flags: <defaults>
</compile_context>

<pallas_src>
import jax
import jax.numpy as jnp
from jax.experimental import pallas as pl
from jax.experimental.pallas import tpu as pltpu


def _round_up(n: int, m: int) -> int:
    return ((n + m - 1) // m) * m


def lr_kernel(x_ref, w_ref, b_ref, o_ref):
    """x_ref: (TM, Fp) VMEM; w_ref: (1, Fp) VMEM; b_ref: (1,) SMEM; o_ref: (1, TM) VMEM."""
    # (1, Fp) contracted with (TM, Fp) along the feature axis -> (1, TM):
    # lane-dense logits row (standard q·k^T-style contraction on the MXU).
    logits = jax.lax.dot_general(
        w_ref[...],
        x_ref[...],
        dimension_numbers=(((1,), (1,)), ((), ())),
        preferred_element_type=jnp.float32,
    ) + b_ref[0]
    # exp runs on the EUP slot; exact 1/(1+e) keeps full f32 precision.
    o_ref[...] = (1.0 / (1.0 + jnp.exp(-logits))).astype(o_ref.dtype)


def lr_forward(x, weight, bias, *, tm_max=512, tile_budget_bytes=24 << 20):
    """x: (B, F); weight: (1, F) (PyTorch Linear layout); bias: (1,). Returns (B, 1) f32."""
    B, F = x.shape
    Fp = _round_up(F, 128)
    itemsize = jnp.dtype(x.dtype).itemsize

    # Batch tile TM: biggest tile whose double-buffered x block fits the VMEM
    # budget. Single-tile path may be any multiple of 8; multi-tile path keeps
    # TM a multiple of 128 so the lane-dense output block obeys (8, 128).
    rows_fit = max(8, (tile_budget_bytes // (2 * Fp * itemsize)) // 8 * 8)
    if _round_up(B, 8) <= min(tm_max, rows_fit):
        TM = _round_up(B, 8)
    else:
        TM = max(128, (min(tm_max, rows_fit) // 128) * 128)
        # TODO(synk): for extremely wide F where even a 128-row tile exceeds VMEM,
        # add a K (feature) grid axis with an f32 accumulator (P3 pattern).
    B_pad = _round_up(B, TM)
    num_tiles = B_pad // TM

    # Zero-pad: feature padding contributes 0 to the dot product; padded batch
    # rows are sliced away after the call.
    x_p = x
    if (B_pad, Fp) != (B, F):
        x_p = jnp.zeros((B_pad, Fp), x.dtype).at[:B, :F].set(x)
    w_p = weight
    if Fp != F:
        w_p = jnp.zeros((1, Fp), weight.dtype).at[:, :F].set(weight)
    b1 = bias.reshape(1).astype(jnp.float32)

    vmem_need = 2 * (TM * Fp * itemsize + TM * 4 + Fp * itemsize) + (2 << 20)
    vmem_limit = int(min(max(vmem_need, 32 << 20), 96 << 20))

    cost = pl.CostEstimate(
        flops=2 * B_pad * Fp,
        transcendentals=B_pad,
        bytes_accessed=B_pad * Fp * itemsize + Fp * itemsize + B_pad * 4,
    )

    out_row = pl.pallas_call(
        lr_kernel,
        out_shape=jax.ShapeDtypeStruct((1, B_pad), jnp.float32),
        grid_spec=pl.GridSpec(
            grid=(num_tiles,),
            in_specs=[
                pl.BlockSpec((TM, Fp), lambda i: (i, 0)),            # x batch tiles
                pl.BlockSpec((1, Fp), lambda i: (0, 0)),             # weight row (reused)
                pl.BlockSpec(memory_space=pltpu.MemorySpace.SMEM),   # bias scalar
            ],
            out_specs=pl.BlockSpec((1, TM), lambda i: (0, i)),       # lane-dense output
        ),
        compiler_params=pltpu.CompilerParams(
            dimension_semantics=("parallel",),   # megacore split on v7x
            vmem_limit_bytes=vmem_limit,
        ),
        cost_estimate=cost,
    )(x_p, w_p, b1)

    return out_row[0, :B].reshape(B, 1)


if __name__ == "__main__":
    key = jax.random.PRNGKey(0)
    kx, kw, kb, kx2 = jax.random.split(key, 4)

    # Small shapes consistent with the module: Linear(n_features, 1).
    batch, n_features = 8, 32
    x = jax.random.normal(kx, (batch, n_features), dtype=jnp.float32)

    # Deterministic params mimicking torch.nn.Linear init (uniform +/- 1/sqrt(F)).
    bound = 1.0 / jnp.sqrt(jnp.float32(n_features))
    weight = jax.random.uniform(kw, (1, n_features), jnp.float32, -bound, bound)
    bias = jax.random.uniform(kb, (1,), jnp.float32, -bound, bound)

    out = lr_forward(x, weight, bias)
    jax.block_until_ready(out)
    ref = jax.nn.sigmoid(x @ weight.T + bias)
    assert out.shape == (batch, 1)
    assert jnp.allclose(out, ref, atol=1e-5), "mismatch vs reference (small case)"

    # Second check: ragged shapes + multi-tile grid (exercises feature/batch
    # padding and the multi-block lane-dense output path).
    b2, f2 = 200, 160
    x2 = jax.random.normal(kx2, (b2, f2), dtype=jnp.float32)
    w2 = jax.random.uniform(kw, (1, f2), jnp.float32, -bound, bound)
    out2 = lr_forward(x2, w2, bias, tm_max=128)
    jax.block_until_ready(out2)
    ref2 = jax.nn.sigmoid(x2 @ w2.T + bias)
    assert out2.shape == (b2, 1)
    assert jnp.allclose(out2, ref2, atol=1e-5), "mismatch vs reference (tiled case)"

    print("KERNEL_OK")
</pallas_src>

<mosaic_0001>
module attributes {stable_mosaic.version = 11 : i64} {
  func.func @lr_kernel(%arg0: i32, %arg1: memref<8x128xf32, #tpu.memory_space<vmem>>, %arg2: memref<1x128xf32, #tpu.memory_space<vmem>>, %arg3: memref<1xf32, #tpu.memory_space<smem>>, %arg4: memref<1x8xf32, #tpu.memory_space<vmem>>) attributes {dimension_semantics = [#tpu.dimension_semantics<parallel>], iteration_bounds = array<i64: 1>, scalar_prefetch = 0 : i64, scratch_operands = 0 : i64, tpu.core_type = #tpu.core_type<tc>, window_params = [{transform_indices = @transform_0, window_bounds = array<i64: 8, 128>}, {pipeline_mode = #tpu.pipeline_mode<synchronous>, transform_indices = @transform_1, window_bounds = array<i64: 1, 128>}, {transform_indices = @transform_2, window_bounds = array<i64: 1>}, {transform_indices = @transform_3, window_bounds = array<i64: 1, 8>}]} {
    %c0 = arith.constant 0 : index
    %c0_0 = arith.constant 0 : index
    %0 = vector.load %arg2[%c0, %c0_0] : memref<1x128xf32, #tpu.memory_space<vmem>>, vector<1x128xf32>
    %c0_1 = arith.constant 0 : index
    %c0_2 = arith.constant 0 : index
    %1 = vector.load %arg1[%c0_1, %c0_2] : memref<8x128xf32, #tpu.memory_space<vmem>>, vector<8x128xf32>
    %cst = arith.constant dense<0.000000e+00> : vector<1x8xf32>
    %2 = tpu.matmul %0, %1, %cst {dimension_numbers = #tpu.dot_dimension_numbers<[1], [1], [0], [0], [0, 0, 1, 0], [], []>} : vector<1x128xf32>, vector<8x128xf32>, vector<1x8xf32> -> vector<1x8xf32>
    %c0_3 = arith.constant 0 : index
    %3 = memref.load %arg3[%c0_3] : memref<1xf32, #tpu.memory_space<smem>>
    %4 = vector.broadcast %3 : f32 to vector<1x8xf32>
    %5 = arith.addf %2, %4 : vector<1x8xf32>
    %cst_4 = arith.constant 0.000000e+00 : f32
    %6 = vector.broadcast %cst_4 : f32 to vector<1x8xf32>
    %7 = arith.subf %6, %5 : vector<1x8xf32>
    %8 = math.exp %7 : vector<1x8xf32>
    %cst_5 = arith.constant 1.000000e+00 : f32
    %9 = vector.broadcast %cst_5 : f32 to vector<1x8xf32>
    %10 = arith.addf %9, %8 : vector<1x8xf32>
    %cst_6 = arith.constant 1.000000e+00 : f32
    %11 = vector.broadcast %cst_6 : f32 to vector<1x8xf32>
    %12 = arith.divf %11, %10 : vector<1x8xf32>
    %c0_7 = arith.constant 0 : index
    %c0_8 = arith.constant 0 : index
    %13 = vector.load %arg4[%c0_7, %c0_8] : memref<1x8xf32, #tpu.memory_space<vmem>>, vector<1x8xf32>
    tpu.vector_store %arg4[%c0_7, %c0_8], %12 {strides = array<i32>} : memref<1x8xf32, #tpu.memory_space<vmem>>, vector<1x8xf32>,
    return
  }
  func.func @transform_0(%arg0: i32) -> (i32, i32) {
    %c0_i32 = arith.constant 0 : i32
    %c0_i32_0 = arith.constant 0 : i32
    return %arg0, %c0_i32 : i32, i32
  }
  func.func @transform_1(%arg0: i32) -> (i32, i32) {
    %c0_i32 = arith.constant 0 : i32
    %c0_i32_0 = arith.constant 0 : i32
    %c0_i32_1 = arith.constant 0 : i32
    return %c0_i32, %c0_i32_0 : i32, i32
  }
  func.func @transform_2(%arg0: i32) -> i32 {
    %c0_i32 = arith.constant 0 : i32
    %c0_i32_0 = arith.constant 0 : i32
    return %c0_i32 : i32
  }
  func.func @transform_3(%arg0: i32) -> (i32, i32) {
    %c0_i32 = arith.constant 0 : i32
    %c0_i32_0 = arith.constant 0 : i32
    return %c0_i32, %arg0 : i32, i32
  }
}

</mosaic_0001>

<bundles_post_ra>
// kernel: tpu_custom_call.1
= control target key start
LH: loop header
LB: loop body
LE: loop exit
PB: predicated region body
PF: predicated region fallthrough
CT: control target
= control target key end

     0   :  { %9 = vsyncpa [#allocation4], 0  ;;  %s242_s0 = inlined_call_operand.hbm [shape: f32[8,128], index: 0, kind: input, shape index: {}]   ;;  %s243_s1 = inlined_call_operand.vmem [shape: f32[1,128], index: 1, kind: input, shape index: {}]   ;;  %s244_s2 = inlined_call_operand.<no memory space> [shape: f32[1], index: 2, kind: input, shape index: {}]   ;;  %s245_s3 = inlined_call_operand.hbm [shape: f32[1,8], index: 3, kind: output, shape index: {}]  }
   0x1   :  { %10 = vsyncpa [#allocation5], 0  ;;  %s188_s12 = smov [#allocation3]   ;;  %s140_s16 = scalar_lea.hbm %s242_s0, 128 }
   0x2   :  { %s17_s13 = sshll.u32 %s188_s12, 4  ;;  %p141_p0 = scmp.ne.s32.totalorder %s242_s0, %s140_s16  ;;  %s18_s13 = int_to_ptr.vmem [resolvable:$true] %s17_s13 }
   0x3   :  { %p144_p1 = scmp.lt.u32.totalorder %s140_s16, %s242_s0 }
   0x5   :  { %p146_p2 = pnand %p144_p1, %p141_p0 }
   0x7   :  { %149 = shalt.err (!%p146_p2)
}
   0x8   :  { %s150_s21 = scalar_lea.vmem %s18_s13, 128  ;;  %p155_p4 = scmp.lt.s32.totalorder %s18_s13, %s18_s13 }
   0x9   :  { %p151_p3 = scmp.ne.s32.totalorder %s18_s13, %s150_s21  ;;  %p156_p5 = scmp.lt.s32.totalorder %s150_s21, %s150_s21 }
   0xb   :  { %p157_p6 = por %p156_p5, %p155_p4 }
   0xd   :  { %p158_p7 = pnand %p157_p6, %p151_p3 }
   0xf   :  { %161 = shalt.err (!%p158_p7)
}
  0x10   :  { %20 = dma.hbm_to_vmem [thread:$0]  %s242_s0, 128, %s18_s13, [#allocation4]  }
  0x11   :  { %184 = dma.done.wait [#allocation4], 128  }
  0x12   :  { %185 = vsyncadd [#allocation4], 4294967168  ;;  %v189_v0 = vmov 0.0   ;;  %vm190_vm0 = vmmov 0   ;;  %v29_v1 = vld [vmem:[#allocation3] sm:$0xff]  ;;  %v31_v3 = vstv %s244_s2  ;;  %s191_s0 = smov [#allocation6]  }
  0x13   :  { %127 = vmatprep.subr.mxu0 %v189_v0  ;;  %129 = vmatprep.mubr.msk.f32.mxu0 %vm190_vm0, %v189_v0  ;;  %v28_v2 = vld [vmem:[%s243_s1] sm:$0x1]  ;;  %s116_s28 = sshll.u32 %s191_s0, 4  ;;  %vm108_vm1 = vcmask 57344   ;;  %s117_s28 = int_to_ptr.vmem [resolvable:$true] %s116_s28 }
  0x14   :  { %128 = vmatpush3.xpose.msra.mxu0 %v29_v1  ;;  %s162_s1 = scalar_lea.vmem %s117_s28, 16  ;;  %s166_s29 = scalar_lea.vmem %s117_s28, 32 }
  0x15   :  { %p163_p8 = scmp.ne.s32.totalorder %s117_s28, %s162_s1  ;;  %p167_p9 = scmp.lt.s32.totalorder %s117_s28, %s117_s28 }
  0x16   :  { %p168_p10 = scmp.lt.s32.totalorder %s166_s29, %s162_s1 }
  0x17   :  { %130 = vmatmul.mubr.f32.vlgmr.msra.gmra.mrb[0].mxu0 %v28_v2 }
  0x18   :  { %p169_p11 = por %p168_p10, %p167_p9 }
  0x1a   :  { %p170_p12 = pnand %p169_p11, %p163_p8 }
  0xea   :  { %v98_v4 = vpop.f32.mrb[0].mxu0 }
  0xeb   :  { %v99_v5 = vadd.f32 %v98_v4, %v31_v3  ;;  %v131_v6 = vpop.f32.mrb[1].mxu0 }
  0xed   :  { %v102_v7 = vsub.f32 0.0, %v99_v5 }
  0xef   :  { %v103_v8 = vmul.f32 1.442695, %v102_v7 }
  0xf1   :  { %136 = vpow2.f32 %v103_v8 }
  0xfb   :  { %v137_v9 = vpop.eup %136 }
  0xfc   :  { %v105_v10 = vadd.f32 1.0, %v137_v9 }
  0xfe   :  { %138 = vrcp.f32 %v105_v10 }
 0x108   :  { %v139_v11 = vpop.eup %138 }
 0x109   :  { %109 = vst.msk [vmem:[#allocation6] sm:$0x1] %vm108_vm1, %v139_v11 }
 0x10a   :  { %173 = shalt.err (!%p170_p12)
}
 0x10b   :  { %s174_s4 = scalar_lea.hbm %s245_s3, 16 }
 0x10c   :  { %p175_p13 = scmp.ne.s32.totalorder %s245_s3, %s174_s4  ;;  %p178_p0 = scmp.lt.u32.totalorder %s174_s4, %s245_s3 }
 0x10e   :  { %p180_p1 = pnand %p178_p0, %p175_p13 }
 0x110   :  { %183 = shalt.err (!%p180_p1)
}
 0x111   :  { %119 = dma.vmem_to_hbm [thread:$0]  %s117_s28, 16, %s245_s3, [#allocation5]  }
 0x112   :  { %186 = dma.done.wait [#allocation5], 16  }
 0x113   :  { %187 = vsyncadd [#allocation5], 4294967280 }
 0x114   :  { %123 = vsyncpa [#allocation4], 1 }
 0x115   :  { %124 = vsyncpa [#allocation5], 1 }

</bundles_post_ra>
